<compile_context>
chip_gen: v6e
topology: v6e:2x2x1
jax: 0.10.0
libtpu: 0.0.40
codegen_flags: <defaults>
</compile_context>

<pallas_src>
import math
import functools

import jax
import jax.numpy as jnp
from jax.experimental import pallas as pl
from jax.experimental.pallas import tpu as pltpu

_LANE = 128
_SUBLANE = 8
_PALLAS_MIN_WORK = 1 << 18          # B*In*Out below this -> plain XLA fallback
_VMEM_LIMIT_BYTES = 48 * 1024 * 1024  # fits v7x's 64 MiB physical VMEM


def _round_up(x, m):
    return ((x + m - 1) // m) * m


def _choose_wtiles(out_features, in_features):
    """Pick lane-dense (Out, In) tiles; pad dims UP to tile multiples."""
    out_p = _round_up(out_features, _LANE)
    in_p = _round_up(in_features, _LANE)

    # Reduction tiles stay big (fewer grid steps, bigger DMAs).
    tk = min(in_p, 1024)
    in_pad = _round_up(in_p, tk)

    # Out tiles capped at 512; keep >= 2 Out tiles when the layer is big enough
    # so both TensorCores get work on v7x (B usually fits a single i-tile).
    tn = min(out_p, 512)
    if out_p >= 2 * _LANE and out_p // tn < 2:
        tn = max(_LANE, _round_up(out_p // 2, _LANE))
    out_pad = _round_up(out_p, tn)
    return tn, tk, out_pad, in_pad


def prepare_noisy_linear(weight_mu, weight_sigma, *, weights_dtype=jnp.bfloat16):
    """One-time weight preparation (do this at init, NOT per forward call):
    pad to tile multiples, transpose to (In, Out), cast to the streaming dtype."""
    out_features, in_features = weight_mu.shape
    tn, tk, out_pad, in_pad = _choose_wtiles(out_features, in_features)
    pad = ((0, out_pad - out_features), (0, in_pad - in_features))
    wmu_t = jnp.asarray(jnp.pad(weight_mu, pad).T, dtype=weights_dtype)
    wsig_t = jnp.asarray(jnp.pad(weight_sigma, pad).T, dtype=weights_dtype)
    return {
        "wmu_t": wmu_t,           # (In_pad, Out_pad)
        "wsig_t": wsig_t,         # (In_pad, Out_pad)
        "out_features": out_features,
        "in_features": in_features,
        "tn": tn,
        "tk": tk,
    }


def noisy_linear_kernel(x_ref, wmu_ref, wsig_ref, epsi_ref, epsj_ref, b_ref, o_ref):
    k = pl.program_id(2)

    @pl.when(k == 0)
    def _():
        # The f32 output block is resident across the reduction axis (its
        # index_map ignores k): initialize it with the noisy bias once.
        o_ref[...] = jnp.broadcast_to(b_ref[...], o_ref.shape)

    x = x_ref[...]                                   # (tm, tk) f32
    wdt = wmu_ref.dtype                              # f32 or bf16 weight stream

    # mu path: x @ Wmu^T  (weights pre-transposed -> contract (1,0), no XLU transpose)
    mu = jnp.dot(x.astype(wdt), wmu_ref[...], preferred_element_type=jnp.float32)

    # sigma path: (x * eps_i) @ Wsig^T   (eps_i is a (1, tk) row -> VPU broadcast)
    xs = (x * epsi_ref[...]).astype(wdt)
    sig = jnp.dot(xs, wsig_ref[...], preferred_element_type=jnp.float32)

    # Accumulate directly into the resident output block (f32, so this is safe).
    o_ref[...] += mu + epsj_ref[...] * sig


@functools.partial(jax.jit, static_argnames=("tm", "tn", "tk"))
def _noisy_linear_pallas(xp, wmu_t, wsig_t, epsi_row, epsj_row, bias_row, *, tm, tn, tk):
    b_pad, in_pad = xp.shape
    _, out_pad = wmu_t.shape
    grid = (b_pad // tm, out_pad // tn, in_pad // tk)

    wbytes = wmu_t.size * wmu_t.dtype.itemsize
    cost = pl.CostEstimate(
        flops=2 * 2 * b_pad * in_pad * out_pad,          # two matmuls
        transcendentals=0,
        bytes_accessed=xp.size * 4 + 2 * wbytes + b_pad * out_pad * 4,
    )

    return pl.pallas_call(
        noisy_linear_kernel,
        out_shape=jax.ShapeDtypeStruct((b_pad, out_pad), jnp.float32),
        grid_spec=pltpu.PrefetchScalarGridSpec(
            num_scalar_prefetch=0,
            grid=grid,
            in_specs=[
                pl.BlockSpec((tm, tk), lambda i, j, k: (i, k)),   # x
                pl.BlockSpec((tk, tn), lambda i, j, k: (k, j)),   # weight_mu^T
                pl.BlockSpec((tk, tn), lambda i, j, k: (k, j)),   # weight_sigma^T
                pl.BlockSpec((1, tk), lambda i, j, k: (0, k)),    # eps_i row
                pl.BlockSpec((1, tn), lambda i, j, k: (0, j)),    # eps_j row
                pl.BlockSpec((1, tn), lambda i, j, k: (0, j)),    # noisy bias row
            ],
            out_specs=pl.BlockSpec((tm, tn), lambda i, j, k: (i, j)),
        ),
        compiler_params=pltpu.CompilerParams(
            dimension_semantics=("parallel", "parallel", "arbitrary"),
            vmem_limit_bytes=_VMEM_LIMIT_BYTES,
        ),
        cost_estimate=cost,
    )(xp, wmu_t, wsig_t, epsi_row, epsj_row, bias_row)


def noisy_linear(x, prepared, bias_mu, bias_sigma, eps_i, eps_j):
    """Forward pass. `prepared` comes from prepare_noisy_linear (cached)."""
    batch, in_features = x.shape
    assert in_features == prepared["in_features"]
    out_features = prepared["out_features"]
    wmu_t, wsig_t = prepared["wmu_t"], prepared["wsig_t"]
    in_pad, out_pad = wmu_t.shape
    tn, tk = prepared["tn"], prepared["tk"]

    # O(Out)/O(In) per-call glue: noisy bias and lane-dense eps rows.
    bias_row = (bias_mu + bias_sigma * eps_j).reshape(1, out_features)
    biasp = jnp.pad(bias_row, ((0, 0), (0, out_pad - out_features)))
    epsip = jnp.pad(eps_i.reshape(1, in_features), ((0, 0), (0, in_pad - in_features)))
    epsjp = jnp.pad(eps_j.reshape(1, out_features), ((0, 0), (0, out_pad - out_features)))
    xp = jnp.pad(x, ((0, 0), (0, in_pad - in_features)))

    if batch * in_features * out_features < _PALLAS_MIN_WORK:
        # Tiny-layer fallback: pallas_call fixed overhead would dominate.
        wdt = wmu_t.dtype
        y = (jnp.dot(xp.astype(wdt), wmu_t, preferred_element_type=jnp.float32)
             + epsjp * jnp.dot((xp * epsip).astype(wdt), wsig_t,
                               preferred_element_type=jnp.float32)
             + biasp)
        return y[:, :out_features]

    # Whole batch in a single i-tile when it fits -> weights streamed from HBM once.
    tm = min(_round_up(batch, _SUBLANE), 1024)
    b_pad = _round_up(batch, tm)
    xpp = jnp.pad(xp, ((0, b_pad - batch), (0, 0)))

    out = _noisy_linear_pallas(xpp, wmu_t, wsig_t, epsip, epsjp, biasp,
                               tm=tm, tn=tn, tk=tk)
    return out[:batch, :out_features]


# ----------------------------------------------------------------------------
# Test harness
# ----------------------------------------------------------------------------

def scale_noise(key, size):
    # x = randn(size); x = sign(x) * sqrt(|x|)
    x = jax.random.normal(key, (size,), dtype=jnp.float32)
    return jnp.sign(x) * jnp.sqrt(jnp.abs(x))


def _reference(x, weight_mu, weight_sigma, bias_mu, bias_sigma, eps_i, eps_j):
    w = weight_mu + weight_sigma * jnp.outer(eps_j, eps_i)
    b = bias_mu + bias_sigma * eps_j
    return x @ w.T + b


def _run_case(key, batch, in_features, out_features, *, weights_dtype,
              atol, rtol, sigma_init=0.5):
    k_x, k_wmu, k_bmu, k_ei, k_ej = jax.random.split(key, 5)

    # deterministic parameter init (mirrors reset_parameters)
    bound = 1.0 / math.sqrt(in_features)
    weight_mu = jax.random.uniform(k_wmu, (out_features, in_features),
                                   minval=-bound, maxval=bound, dtype=jnp.float32)
    bias_mu = jax.random.uniform(k_bmu, (out_features,),
                                 minval=-bound, maxval=bound, dtype=jnp.float32)
    weight_sigma = jnp.full((out_features, in_features),
                            sigma_init / math.sqrt(in_features), dtype=jnp.float32)
    bias_sigma = jnp.full((out_features,),
                          sigma_init / math.sqrt(out_features), dtype=jnp.float32)

    # factorized noise (mirrors reset_noise; training=True path)
    eps_i = scale_noise(k_ei, in_features)
    eps_j = scale_noise(k_ej, out_features)

    x = jax.random.normal(k_x, (batch, in_features), dtype=jnp.float32)

    prepared = prepare_noisy_linear(weight_mu, weight_sigma, weights_dtype=weights_dtype)
    out = noisy_linear(x, prepared, bias_mu, bias_sigma, eps_i, eps_j)
    out = jax.block_until_ready(out)

    ref = _reference(x, weight_mu, weight_sigma, bias_mu, bias_sigma, eps_i, eps_j)
    assert out.shape == (batch, out_features)
    err = float(jnp.max(jnp.abs(out - ref)))
    assert jnp.allclose(out, ref, atol=atol, rtol=rtol), f"mismatch: max abs err {err}"
    return out


if __name__ == "__main__":
    root = jax.random.PRNGKey(0)
    k0, k1, k2 = jax.random.split(root, 3)

    # 1) Tiny RL-typical layer -> exercises the XLA fallback path.
    _run_case(k0, batch=4, in_features=32, out_features=64,
              weights_dtype=jnp.float32, atol=1e-4, rtol=1e-4)

    # 2) Mid-size layer, f32 weight streaming -> Pallas kernel, tight tolerance.
    _run_case(k1, batch=32, in_features=512, out_features=512,
              weights_dtype=jnp.float32, atol=1e-3, rtol=1e-3)

    # 3) Ragged layer, bf16 weight streaming (f32 accumulation) -> Pallas kernel.
    _run_case(k2, batch=37, in_features=200, out_features=130,
              weights_dtype=jnp.bfloat16, atol=5e-2, rtol=5e-2)

    print("KERNEL_OK")
</pallas_src>

<mosaic_0001>
module attributes {stable_mosaic.version = 11 : i64} {
  func.func @noisy_linear_kernel(%arg0: i32, %arg1: i32, %arg2: i32, %arg3: memref<32x512xf32, #tpu.memory_space<vmem>>, %arg4: memref<512x256xf32, #tpu.memory_space<vmem>>, %arg5: memref<512x256xf32, #tpu.memory_space<vmem>>, %arg6: memref<1x512xf32, #tpu.memory_space<vmem>>, %arg7: memref<1x256xf32, #tpu.memory_space<vmem>>, %arg8: memref<1x256xf32, #tpu.memory_space<vmem>>, %arg9: memref<32x256xf32, #tpu.memory_space<vmem>>) attributes {dimension_semantics = [#tpu.dimension_semantics<parallel>, #tpu.dimension_semantics<parallel>, #tpu.dimension_semantics<arbitrary>], iteration_bounds = array<i64: 1, 2, 1>, scalar_prefetch = 0 : i64, scratch_operands = 0 : i64, tpu.core_type = #tpu.core_type<tc>, window_params = [{transform_indices = @transform_0, window_bounds = array<i64: 32, 512>}, {transform_indices = @transform_1, window_bounds = array<i64: 512, 256>}, {transform_indices = @transform_2, window_bounds = array<i64: 512, 256>}, {transform_indices = @transform_3, window_bounds = array<i64: 1, 512>}, {transform_indices = @transform_4, window_bounds = array<i64: 1, 256>}, {transform_indices = @transform_5, window_bounds = array<i64: 1, 256>}, {transform_indices = @transform_6, window_bounds = array<i64: 32, 256>}]} {
    %c0_i32 = arith.constant 0 : i32
    %0 = arith.cmpi eq, %arg2, %c0_i32 : i32
    %1 = arith.extui %0 : i1 to i32
    %c0_i32_0 = arith.constant 0 : i32
    %2 = arith.cmpi ne, %1, %c0_i32_0 : i32
    scf.if %2 {
      %c0_15 = arith.constant 0 : index
      %c0_16 = arith.constant 0 : index
      %18 = vector.load %arg8[%c0_15, %c0_16] : memref<1x256xf32, #tpu.memory_space<vmem>>, vector<1x256xf32>
      %19 = vector.shape_cast %18 : vector<1x256xf32> to vector<1x256xf32>
      %20 = vector.broadcast %19 : vector<1x256xf32> to vector<32x256xf32>
      %c0_17 = arith.constant 0 : index
      %c0_18 = arith.constant 0 : index
      %21 = vector.load %arg9[%c0_17, %c0_18] : memref<32x256xf32, #tpu.memory_space<vmem>>, vector<32x256xf32>
      tpu.vector_store %arg9[%c0_17, %c0_18], %20 {strides = array<i32>} : memref<32x256xf32, #tpu.memory_space<vmem>>, vector<32x256xf32>,
    } else {
    }
    %c0 = arith.constant 0 : index
    %c0_1 = arith.constant 0 : index
    %3 = vector.load %arg3[%c0, %c0_1] : memref<32x512xf32, #tpu.memory_space<vmem>>, vector<32x512xf32>
    %c0_2 = arith.constant 0 : index
    %c0_3 = arith.constant 0 : index
    %4 = vector.load %arg4[%c0_2, %c0_3] : memref<512x256xf32, #tpu.memory_space<vmem>>, vector<512x256xf32>
    %cst = arith.constant dense<0.000000e+00> : vector<32x256xf32>
    %5 = tpu.matmul %3, %4, %cst {dimension_numbers = #tpu.dot_dimension_numbers<[1], [0], [0], [1], [0, 0, 1, 1], [], []>} : vector<32x512xf32>, vector<512x256xf32>, vector<32x256xf32> -> vector<32x256xf32>
    %c0_4 = arith.constant 0 : index
    %c0_5 = arith.constant 0 : index
    %6 = vector.load %arg6[%c0_4, %c0_5] : memref<1x512xf32, #tpu.memory_space<vmem>>, vector<1x512xf32>
    %7 = vector.broadcast %6 : vector<1x512xf32> to vector<32x512xf32>
    %8 = arith.mulf %3, %7 : vector<32x512xf32>
    %c0_6 = arith.constant 0 : index
    %c0_7 = arith.constant 0 : index
    %9 = vector.load %arg5[%c0_6, %c0_7] : memref<512x256xf32, #tpu.memory_space<vmem>>, vector<512x256xf32>
    %cst_8 = arith.constant dense<0.000000e+00> : vector<32x256xf32>
    %10 = tpu.matmul %8, %9, %cst_8 {dimension_numbers = #tpu.dot_dimension_numbers<[1], [0], [0], [1], [0, 0, 1, 1], [], []>} : vector<32x512xf32>, vector<512x256xf32>, vector<32x256xf32> -> vector<32x256xf32>
    %c0_9 = arith.constant 0 : index
    %c0_10 = arith.constant 0 : index
    %11 = vector.load %arg9[%c0_9, %c0_10] : memref<32x256xf32, #tpu.memory_space<vmem>>, vector<32x256xf32>
    %c0_11 = arith.constant 0 : index
    %c0_12 = arith.constant 0 : index
    %12 = vector.load %arg7[%c0_11, %c0_12] : memref<1x256xf32, #tpu.memory_space<vmem>>, vector<1x256xf32>
    %13 = vector.broadcast %12 : vector<1x256xf32> to vector<32x256xf32>
    %14 = arith.mulf %13, %10 : vector<32x256xf32>
    %15 = arith.addf %5, %14 : vector<32x256xf32>
    %16 = arith.addf %11, %15 : vector<32x256xf32>
    %c0_13 = arith.constant 0 : index
    %c0_14 = arith.constant 0 : index
    %17 = vector.load %arg9[%c0_13, %c0_14] : memref<32x256xf32, #tpu.memory_space<vmem>>, vector<32x256xf32>
    tpu.vector_store %arg9[%c0_13, %c0_14], %16 {strides = array<i32>} : memref<32x256xf32, #tpu.memory_space<vmem>>, vector<32x256xf32>,
    return
  }
  func.func @transform_0(%arg0: i32, %arg1: i32, %arg2: i32) -> (i32, i32) {
    %c0_i32 = arith.constant 0 : i32
    return %arg0, %arg2 : i32, i32
  }
  func.func @transform_1(%arg0: i32, %arg1: i32, %arg2: i32) -> (i32, i32) {
    %c0_i32 = arith.constant 0 : i32
    return %arg2, %arg1 : i32, i32
  }
  func.func @transform_2(%arg0: i32, %arg1: i32, %arg2: i32) -> (i32, i32) {
    %c0_i32 = arith.constant 0 : i32
    return %arg2, %arg1 : i32, i32
  }
  func.func @transform_3(%arg0: i32, %arg1: i32, %arg2: i32) -> (i32, i32) {
    %c0_i32 = arith.constant 0 : i32
    %c0_i32_0 = arith.constant 0 : i32
    return %c0_i32, %arg2 : i32, i32
  }
  func.func @transform_4(%arg0: i32, %arg1: i32, %arg2: i32) -> (i32, i32) {
    %c0_i32 = arith.constant 0 : i32
    %c0_i32_0 = arith.constant 0 : i32
    return %c0_i32, %arg1 : i32, i32
  }
  func.func @transform_5(%arg0: i32, %arg1: i32, %arg2: i32) -> (i32, i32) {
    %c0_i32 = arith.constant 0 : i32
    %c0_i32_0 = arith.constant 0 : i32
    return %c0_i32, %arg1 : i32, i32
  }
  func.func @transform_6(%arg0: i32, %arg1: i32, %arg2: i32) -> (i32, i32) {
    %c0_i32 = arith.constant 0 : i32
    return %arg0, %arg1 : i32, i32
  }
}

</mosaic_0001>

<bundles_post_ra>
// kernel: _noisy_linear_pallas.1
= control target key start
LH: loop header
LB: loop body
LE: loop exit
PB: predicated region body
PF: predicated region fallthrough
CT: control target
= control target key end

     0   :  { %s2371_s0 = inlined_call_operand.hbm [shape: f32[32,512], index: 0, kind: input, shape index: {}]   ;;  %s2372_s1 = inlined_call_operand.hbm [shape: f32[512,512], index: 1, kind: input, shape index: {}]   ;;  %s2373_s2 = inlined_call_operand.hbm [shape: f32[512,512], index: 2, kind: input, shape index: {}]   ;;  %s2374_s3 = inlined_call_operand.vmem [shape: f32[1,512], index: 3, kind: input, shape index: {}]   ;;  %s2375_s4 = inlined_call_operand.hbm [shape: f32[1,512], index: 4, kind: input, shape index: {}]   ;;  %s2376_s5 = inlined_call_operand.vmem [shape: f32[1,512], index: 5, kind: input, shape index: {}]   ;;  %s2377_s6 = inlined_call_operand.hbm [shape: f32[32,512], index: 6, kind: output, shape index: {}]  }
   0x1   :  { %2389 = sst [smem:[#allocation20_spill]] %s2372_s1 }
   0x2   :  { %2390 = sst [smem:[#allocation21_spill]] %s2373_s2 }
   0x3   :  { %11 = vsyncpa [#allocation3], 0 }
   0x4   :  { %12 = vsyncpa [#allocation6], 0 }
   0x5   :  { %14 = vsyncpa [#allocation6 + $0x1], 0 }
   0x6   :  { %15 = vsyncpa [#allocation9], 0 }
   0x7   :  { %17 = vsyncpa [#allocation9 + $0x1], 0 }
   0x8   :  { %18 = vsyncpa [#allocation4], 0 }
   0x9   :  { %20 = vsyncpa [#allocation4 + $0x1], 0  ;;  %s1744_s21 = smov 0   ;;  %s1746_s22 = smov 0  }
   0xa   :  { %s1748_s23 = smov 0   ;;  %s1750_s24 = smov 0  }
   0xb   :  { %s1752_s25 = smov 0   ;;  %s1754_s26 = smov 0  }
   0xc LB: > { %2391 = sst [smem:[#allocation15_spill]] %s1683_s23  ;;  %s41_s27 = sadd.s32 1, %s1691_s25  ;;  %s1695_s26 = sphi %s1754_s26, %s26_s26   ;;  %s1691_s25 = sphi %s1752_s25, %s2421_s25   ;;  %s1687_s24 = sphi %s1750_s24, %s2420_s24   ;;  %s1683_s23 = sphi %s1748_s23, %s2416_s23   ;;  %s1679_s22 = sphi %s1746_s22, %s2419_s22   ;;  %s1675_s21 = sphi %s1744_s21, %s2418_s21  }
   0xd   : > { %2392 = sst [smem:[#allocation16_spill]] %s1695_s26  ;;  %s82_s28 = sadd.s32 1, %s1683_s23 }
   0xe   : > { %p43_p0 = scmp.ge.s32.totalorder %s41_s27, 2  ;;  %p89_p1 = scmp.ne.s32.totalorder %s1683_s23, %s1679_s22 }
   0xf   : > { %p90_p2 = scmp.eq.s32.totalorder %s1695_s26, 0  ;;  %p1438_p5 = scmp.lt.s32.totalorder %s1695_s26, 2 }
  0x10   : > { %s2423_s27 = smov (%p43_p0, %s41_s27), 0  ;;  %s280_s7 = sand.u32 1, %s1695_s26  }
  0x11   : > { %2393 = sst [smem:[#allocation17_spill]] %s2423_s27  ;;  %p1784_p3 = por %p90_p2, %p89_p1 }
  0x12   : > { %s78_s30 = ssub.s32 %s1691_s25, %s2423_s27  ;;  %s1794_s8 = sand.u32 1, %s1683_s23  }
  0x13   : > { %p80_p6 = scmp.eq.s32.totalorder %s78_s30, 0  ;;  %s1382_s10 = sshll.u32 %s1794_s8, 10 }
  0x14   : > { %s1403_s11 = sshll.u32 %s1691_s25, 8  ;;  %s2396_s1 = sld [smem:[#allocation20_spill]] }
  0x15   : > { %s1797_s9 = scalar_select %p80_p6, %s1683_s23, %s82_s28  }
  0x16   : > { %s284_s15 = scalar_lea.vmem [#allocation5], %s1382_s10  ;;  %p1810_p7 = pnand %p1438_p5, %p1784_p3 }
  0x17   : > { %2395 = sst [smem:[#allocation18_spill]] %s1797_s9  ;;  %s294_s16 = sshll.u32 %s284_s15, 4  ;;  %s295_s16 = int_to_ptr.vmem [resolvable:$true] %s294_s16 }
  0x18   : > { %s1814_s18 = scalar_lea.sflag [#allocation6], %s280_s7  ;;  %p2388_p8 = pneg %p1810_p7 }
  0x19   : > { %s1510_s19 = scalar_lea.vmem %s295_s16, 16384  ;;  %s1697_s20 = smov [#allocation5]  }
  0x1a   : > { %s293_s14 = scalar_lea.hbm %s2396_s1, %s1403_s11  ;;  %p1511_p9 = scmp.ne.s32.totalorder %s295_s16, %s1510_s19 }
  0x1b   : > { %s1515_s28 = sshll.u32 %s1697_s20, 4  ;;  %s1516_s28 = int_to_ptr.vmem [resolvable:$false] %s1515_s28 }
  0x1c   : > { %p1513_p10 = pnand %p1511_p9, %p2388_p8  ;;  %s1517_s29 = scalar_lea.vmem %s1516_s28, 32768 }
  0x1d   : > { %p1518_p12 = scmp.lt.s32.totalorder %s295_s16, %s1516_s28  ;;  %p1519_p13 = scmp.lt.s32.totalorder %s1517_s29, %s1510_s19 }
  0x1e   : > { %p1514_p11 = pneg %p1513_p10 }
  0x1f   : > { %p1520_p0 = por %p1519_p13, %p1518_p12 }
  0x21   : > { %p1521_p2 = pnand %p1520_p0, %p1514_p11 }
  0x23   : > { %1524 = shalt.err (!%p1521_p2)
}
  0x24   : > { %s2378_s30 = smov 512   ;;  %s2380_s7 = smov 256  }
  0x25   : > { %s2381_s12 = smov 16   ;;  %s2398_s2 = sld [smem:[#allocation21_spill]] }
  0x26   : > { %1426 = dma.hbm_to_vmem [thread:$0]  (!%p1810_p7), %s293_s14, 16384, %s295_s16, %s1814_s18, %s2378_s30, %s2380_s7, %s2381_s12  }
  0x27   : > { %s308_s20 = scalar_lea.vmem [#allocation7], %s1382_s10  ;;  %s1839_s29 = sadd.s32 4294967295, %s1695_s26  }
  0x28   : > { %s318_s28 = sshll.u32 %s308_s20, 4  ;;  %s1377_s1 = sadd.s32 4294967294, %s1695_s26   ;;  %s1836_s28 = int_to_ptr.vmem [resolvable:$true] %s318_s28 }
  0x29   : > { %p95_p3 = scmp.ne.s32.totalorder %s1679_s22, %s1675_s21  ;;  %p2382_p5 = scmp.eq.s32.totalorder %s1839_s29, 0 }
  0x2a   : > { %p227_p6 = scmp.eq.s32.totalorder %s1839_s29, 1  ;;  %p233_p9 = scmp.eq.s32.totalorder %s1377_s1, 1 }
  0x2b   : > { %s1832_s19 = scalar_lea.hbm %s2398_s2, %s1403_s11  ;;  %p1848_p10 = por %p2382_p5, %p95_p3 }
  0x2c   : > { %p1378_p11 = scmp.ge.s32.totalorder %s1695_s26, 1  ;;  %p1856_p12 = por %p227_p6, %p89_p1 }
  0x2d   : > { %p1860_p13 = por %p233_p9, %p95_p3  ;;  %p240_p0 = scmp.lt.s32.totalorder %s1695_s26, 3 }
  0x2e   : > { %s1701_s1 = smov [#allocation2]   ;;  %s1388_s15 = sshll.u32 %s1794_s8, 1 }
  0x2f   : > { %s2401_s14 = scalar_select %p1860_p13, 1, 0 }
  0x30   : > { %p1865_p2 = pnand %p1378_p11, %p240_p0  ;;  %s258_s13 = sshll.u32 %s1701_s1, 4  ;;  %s1869_s13 = int_to_ptr.vmem [resolvable:$true] %s258_s13 }
  0x31   : > { %2402 = sst [smem:[#allocation19_spill]] %s2401_s14  ;;  %s1538_s20 = scalar_lea.vmem %s1836_s28, 16384 }
  0x32   : > { %p1419_p1 = pneg %p1865_p2  ;;  %p1539_p6 = scmp.ne.s32.totalorder %s1836_s28, %s1538_s20 }
  0x33   : > { %s1702_s30 = smov [#allocation7]  }
  0x34   : > { %p1541_p3 = pnand %p1539_p6, %p2388_p8  ;;  %s1543_s7 = sshll.u32 %s1702_s30, 4  ;;  %s1544_s7 = int_to_ptr.vmem [resolvable:$false] %s1543_s7 }
  0x35   : > { %s1545_s12 = scalar_lea.vmem %s1544_s7, 32768  ;;  %p1546_p11 = scmp.lt.s32.totalorder %s1836_s28, %s1544_s7 }
  0x36   : > { %p1542_p9 = pneg %p1541_p3  ;;  %p1547_p0 = scmp.lt.s32.totalorder %s1545_s12, %s1538_s20 }
  0x38   : > { %p1548_p4 = por %p1547_p0, %p1546_p11 }
  0x3a   : > { %p1549_p5 = pnand %p1548_p4, %p1542_p9 }
  0x3c   : > { %1552 = shalt.err (!%p1549_p5)
}
  0x3d   : > { %s2404_s1 = smov 16   ;;  %s2405_s2 = smov 256  }
  0x3e   : > { %s2406_s27 = smov 512   ;;  %p2407_p6 = scmp.eq.s32.totalorder %s1839_s29, 0 }
  0x3f   : > { %1429 = dma.hbm_to_vmem [thread:$0]  (!%p1810_p7), %s1832_s19, 16384, %s1836_s28, %s1814_s18, %s2406_s27, %s2405_s2, %s2404_s1  }
  0x40   : > { %p1893_p4 = pnand %p1419_p1, %p2407_p6  ;;  %s1405_s7 = sshll.u32 %s1691_s25, 5 }
  0x41   : > { %s332_s12 = scalar_lea.vmem [#allocation8], %s1388_s15  ;;  %s1901_s26 = scalar_lea.hbm %s2375_s4, %s1405_s7 }
  0x42   : > { %s340_s20 = sshll.u32 %s332_s12, 4  ;;  %p1555_p5 = pneg %p1893_p4  ;;  %s341_s20 = int_to_ptr.vmem [resolvable:$true] %s340_s20 }
  0x43   : > { %s1564_s14 = scalar_lea.vmem %s1869_s13, 2048  ;;  %p1572_p1 = scmp.lt.s32.totalorder %s1869_s13, %s1869_s13 }
  0x44   : > { %p1565_p3 = scmp.ne.s32.totalorder %s1869_s13, %s1564_s14  ;;  %p1573_p0 = scmp.lt.s32.totalorder %s1564_s14, %s1564_s14 }
  0x46   : > { %p1567_p9 = pnand %p1565_p3, %p1555_p5  ;;  %p1574_p6 = por %p1573_p0, %p1572_p1 }
  0x48   : > { %p1568_p11 = pneg %p1567_p9 }
  0x4a   : > { %p1575_p8 = pnand %p1574_p6, %p1568_p11 }
  0x4c   : > { %1578 = shalt.err (!%p1575_p8)
}
  0x4d   : > { %s1703_s2 = smov 32   ;;  %s329_s18 = scalar_lea.sflag [#allocation9], %s1794_s8 }
  0x4e   : > { %1422 = dma.hbm_to_vmem [thread:$0]  (!%p1893_p4), %s2371_s0, 2048, %s1869_s13, [#allocation3], %s2406_s27, %s2406_s27, %s1703_s2  }
  0x4f   : > { %s1592_s19 = scalar_lea.vmem %s341_s20, 32  ;;  %p2409_p3 = pneg %p1810_p7 }
  0x50   : > { %p1593_p5 = scmp.ne.s32.totalorder %s341_s20, %s1592_s19  ;;  %s1704_s28 = smov [#allocation8]  }
  0x51   : > { %s1597_s14 = sshll.u32 %s1704_s28, 4  ;;  %s1598_s14 = int_to_ptr.vmem [resolvable:$false] %s1597_s14 }
  0x52   : > { %p1595_p9 = pnand %p1593_p5, %p2409_p3  ;;  %s1599_s15 = scalar_lea.vmem %s1598_s14, 64 }
  0x53   : > { %p1600_p11 = scmp.lt.s32.totalorder %s341_s20, %s1598_s14  ;;  %p1601_p1 = scmp.lt.s32.totalorder %s1599_s15, %s1592_s19 }
  0x54   : > { %p1596_p8 = pneg %p1595_p9 }
  0x55   : > { %p1602_p0 = por %p1601_p1, %p1600_p11 }
  0x57   : > { %p1603_p6 = pnand %p1602_p0, %p1596_p8 }
  0x59   : > { %1606 = shalt.err (!%p1603_p6)
}
  0x5a   : > { %1432 = dma.hbm_to_vmem [thread:$0]  (!%p1810_p7), %s1901_s26, 32, %s341_s20, %s329_s18  }
  0x5b   : > { %357 = sbr.rel (%p1865_p2) target bundleno = 470 (0x1d6), region = 44  ;;  %p2410_p4 = scmp.eq.s32.totalorder (!%p1865_p2), %s1839_s29, 0 }
  0x60   : > { %1658 = dma.done.wait (%p2410_p4), [#allocation3], 2048   ;;  %p2411_p5 = pmov %p2410_p4 }
  0x61   : > { %s363_s27 = sand.u32 1, %s1839_s29   ;;  %s1932_s8 = sand.u32 1, %s1679_s22  }
  0x62   : > { %1660 = vsyncadd (%p2411_p5), [#allocation3], 4294965248  ;;  %s1393_s13 = sshll.u32 %s1932_s8, 10  ;;  %s364_s17 = scalar_lea.sflag [#allocation6], %s363_s27 }
  0x63   : > { %s1935_s1 = scalar_lea.vmem [#allocation5], %s1393_s13 }
  0x64   : > { %1662 = dma.done.wait (%p1848_p10), %s364_s17, 32768  }
  0x65   : > { %1664 = vsyncadd (%p1848_p10), %s364_s17, 4294934528  ;;  %s1395_s26 = sshll.u32 %s1932_s8, 1  ;;  %s1942_s16 = scalar_lea.vmem [#allocation7], %s1393_s13 }
  0x66   : > { %s382_s30 = scalar_lea.sflag [#allocation9], %s1932_s8  ;;  %s1945_s29 = scalar_lea.vmem [#allocation8], %s1395_s26 }
  0x67   : > { %1666 = dma.done.wait (%p1848_p10), %s382_s30, 32  }
  0x68   : > { %1668 = vsyncadd (%p1848_p10), %s382_s30, 4294967264  ;;  %v688_v0 = vld [vmem:[%s1942_s16 + $0xf8] sm:$0xff]  ;;  %v687_v2 = vld [vmem:[%s1942_s16 + $0xf0] sm:$0xff]  ;;  %s1397_s12 = sshll.u32 %s1687_s24, 1  ;;  %s1396_s9 = sshll.u32 %s1932_s8, 6 }
  0x69   : > { %v752_v1 = vld [vmem:[%s1942_s16 + $0x2f8] sm:$0xff]  ;;  %785 = vmatprep.subr.mxu0 %v688_v0  ;;  %v751_v3 = vld [vmem:[%s1942_s16 + $0x2f0] sm:$0xff]  ;;  %v686_v4 = vld [vmem:[%s1942_s16 + $0xe8] sm:$0xff]  ;;  %p445_p7 = scmp.lt.s32.totalorder %s1397_s12, 3  ;;  %s2306_s18 = scalar_lea.vmem [#allocation10], %s1396_s9 }
  0x6a   : > { %874 = vmatprep.subr.mxu1 %v752_v1  ;;  %v750_v5 = vld [vmem:[%s1942_s16 + $0x2e8] sm:$0xff]  ;;  %786 = vmatpush1.msra.mxu0 %v687_v2  ;;  %v685_v6 = vld [vmem:[%s1942_s16 + $0xe0] sm:$0xff]  ;;  %v684_v8 = vld [vmem:[%s1942_s16 + $0xd8] sm:$0xff]  ;;  %s1406_s19 = sshll.u32 %s1687_s24, 8  ;;  %s1202_s28 = sshll.u32 %s2306_s18, 4  ;;  %s2321_s28 = int_to_ptr.vmem [resolvable:$true] %s1202_s28 }
  0x6b   : > { %875 = vmatpush1.msra.mxu1 %v751_v3  ;;  %v749_v7 = vld [vmem:[%s1942_s16 + $0x2e0] sm:$0xff]  ;;  %787 = vmatprep.subr.mxu0 %v686_v4  ;;  %v748_v9 = vld [vmem:[%s1942_s16 + $0x2d8] sm:$0xff]  ;;  %v683_v10 = vld [vmem:[%s1942_s16 + $0xd0] sm:$0xff]  ;;  %s2425_s12 = smov (!%p445_p7, %s1397_s12), 3  ;;  %s2319_s27 = scalar_lea.hbm %s2377_s6, %s1406_s19 }
  0x6c   : > { %876 = vmatprep.subr.mxu1 %v750_v5  ;;  %v747_v11 = vld [vmem:[%s1942_s16 + $0x2d0] sm:$0xff]  ;;  %788 = vmatpush1.msra.mxu0 %v685_v6  ;;  %v682_v12 = vld [vmem:[%s1942_s16 + $0xc8] sm:$0xff]  ;;  %v681_v14 = vld [vmem:[%s1942_s16 + $0xc0] sm:$0xff]  ;;  %s447_s23 = scalar_lea.vmem %s2376_s5, %s2425_s12  ;;  %s1186_s24 = scalar_lea.sflag [#allocation4], %s1932_s8 }
  0x6d   : > { %877 = vmatpush1.msra.mxu1 %v749_v7  ;;  %v746_v13 = vld [vmem:[%s1942_s16 + $0x2c8] sm:$0xff]  ;;  %789 = vmatprep.subr.mxu0 %v684_v8  ;;  %v745_v15 = vld [vmem:[%s1942_s16 + $0x2c0] sm:$0xff]  ;;  %v680_v16 = vld [vmem:[%s1942_s16 + $0xb8] sm:$0xff]  ;;  %s1607_s13 = scalar_lea.vmem %s2321_s28, 1024  ;;  %s1705_s17 = smov [#allocation10]  }
  0x6e   : > { %878 = vmatprep.subr.mxu1 %v748_v9  ;;  %790 = vmatpush1.msra.mxu0 %v683_v10  ;;  %v744_v17 = vld [vmem:[%s1942_s16 + $0x2b8] sm:$0xff]  ;;  %v679_v18 = vld [vmem:[%s1942_s16 + $0xb0] sm:$0xff]  ;;  %v678_v20 = vld [vmem:[%s1942_s16 + $0xa8] sm:$0xff]  ;;  %p1608_p10 = scmp.ne.s32.totalorder %s2321_s28, %s1607_s13 }
  0x6f   : > { %879 = vmatpush1.msra.mxu1 %v747_v11  ;;  %791 = vmatprep.subr.mxu0 %v682_v12  ;;  %v743_v19 = vld [vmem:[%s1942_s16 + $0x2b0] sm:$0xff]  ;;  %v742_v21 = vld [vmem:[%s1942_s16 + $0x2a8] sm:$0xff]  ;;  %v677_v22 = vld [vmem:[%s1942_s16 + $0xa0] sm:$0xff] }
  0x70   : > { %880 = vmatprep.subr.mxu1 %v746_v13  ;;  %792 = vmatpush1.msra.mxu0 %v681_v14  ;;  %v741_v23 = vld [vmem:[%s1942_s16 + $0x2a0] sm:$0xff]  ;;  %v676_v24 = vld [vmem:[%s1942_s16 + $0x98] sm:$0xff]  ;;  %v675_v26 = vld [vmem:[%s1942_s16 + $0x90] sm:$0xff]  ;;  %p1609_p2 = pnand %p1608_p10, %p1856_p12 }
  0x71   : > { %881 = vmatpush1.msra.mxu1 %v745_v15  ;;  %793 = vmatprep.subr.mxu0 %v680_v16  ;;  %v740_v25 = vld [vmem:[%s1942_s16 + $0x298] sm:$0xff]  ;;  %v739_v27 = vld [vmem:[%s1942_s16 + $0x290] sm:$0xff]  ;;  %v674_v28 = vld [vmem:[%s1942_s16 + $0x88] sm:$0xff] }
  0x72   : > { %882 = vmatprep.subr.mxu1 %v744_v17  ;;  %794 = vmatpush1.msra.mxu0 %v679_v18  ;;  %v738_v29 = vld [vmem:[%s1942_s16 + $0x288] sm:$0xff]  ;;  %v673_v30 = vld [vmem:[%s1942_s16 + $0x80] sm:$0xff]  ;;  %v672_v32 = vld [vmem:[%s1942_s16 + $0x78] sm:$0xff]  ;;  %p1610_p3 = pneg %p1609_p2 }
  0x73   : > { %883 = vmatpush1.msra.mxu1 %v743_v19  ;;  %795 = vmatprep.subr.mxu0 %v678_v20  ;;  %v737_v31 = vld [vmem:[%s1942_s16 + $0x280] sm:$0xff]  ;;  %v736_v33 = vld [vmem:[%s1942_s16 + $0x278] sm:$0xff]  ;;  %v671_v34 = vld [vmem:[%s1942_s16 + $0x70] sm:$0xff] }
  0x74   : > { %884 = vmatprep.subr.mxu1 %v742_v21  ;;  %796 = vmatpush1.msra.mxu0 %v677_v22  ;;  %v735_v35 = vld [vmem:[%s1942_s16 + $0x270] sm:$0xff]  ;;  %v670_v36 = vld [vmem:[%s1942_s16 + $0x68] sm:$0xff]  ;;  %v669_v38 = vld [vmem:[%s1942_s16 + $0x60] sm:$0xff] }
  0x75   : > { %885 = vmatpush1.msra.mxu1 %v741_v23  ;;  %797 = vmatprep.subr.mxu0 %v676_v24  ;;  %v734_v37 = vld [vmem:[%s1942_s16 + $0x268] sm:$0xff]  ;;  %v733_v39 = vld [vmem:[%s1942_s16 + $0x260] sm:$0xff]  ;;  %v668_v40 = vld [vmem:[%s1942_s16 + $0x58] sm:$0xff] }
  0x76   : > { %886 = vmatprep.subr.mxu1 %v740_v25  ;;  %798 = vmatpush1.msra.mxu0 %v675_v26  ;;  %v732_v41 = vld [vmem:[%s1942_s16 + $0x258] sm:$0xff]  ;;  %v667_v42 = vld [vmem:[%s1942_s16 + $0x50] sm:$0xff]  ;;  %v666_v44 = vld [vmem:[%s1942_s16 + $0x48] sm:$0xff] }
  0x77   : > { %887 = vmatpush1.msra.mxu1 %v739_v27  ;;  %799 = vmatprep.subr.mxu0 %v674_v28  ;;  %v731_v43 = vld [vmem:[%s1942_s16 + $0x250] sm:$0xff]  ;;  %v730_v45 = vld [vmem:[%s1942_s16 + $0x248] sm:$0xff]  ;;  %v665_v46 = vld [vmem:[%s1942_s16 + $0x40] sm:$0xff] }
  0x78   : > { %888 = vmatprep.subr.mxu1 %v738_v29  ;;  %800 = vmatpush1.msra.mxu0 %v673_v30  ;;  %v729_v47 = vld [vmem:[%s1942_s16 + $0x240] sm:$0xff]  ;;  %v664_v48 = vld [vmem:[%s1942_s16 + $0x38] sm:$0xff]  ;;  %v663_v50 = vld [vmem:[%s1942_s16 + $0x30] sm:$0xff]  ;;  %v457_v30 = vlaneseq }
  0x79   : > { %889 = vmatpush1.msra.mxu1 %v737_v31  ;;  %801 = vmatprep.subr.mxu0 %v672_v32  ;;  %v728_v49 = vld [vmem:[%s1942_s16 + $0x238] sm:$0xff]  ;;  %v727_v51 = vld [vmem:[%s1942_s16 + $0x230] sm:$0xff]  ;;  %v662_v52 = vld [vmem:[%s1942_s16 + $0x28] sm:$0xff] }
  0x7a   : > { %890 = vmatprep.subr.mxu1 %v736_v33  ;;  %802 = vmatpush1.msra.mxu0 %v671_v34  ;;  %v726_v53 = vld [vmem:[%s1942_s16 + $0x228] sm:$0xff]  ;;  %v661_v54 = vld [vmem:[%s1942_s16 + $0x20] sm:$0xff]  ;;  %v660_v56 = vld [vmem:[%s1942_s16 + $0x18] sm:$0xff] }
  0x7b   : > { %891 = vmatpush1.msra.mxu1 %v735_v35  ;;  %803 = vmatprep.subr.mxu0 %v670_v36  ;;  %v725_v55 = vld [vmem:[%s1942_s16 + $0x220] sm:$0xff]  ;;  %v724_v57 = vld [vmem:[%s1942_s16 + $0x218] sm:$0xff]  ;;  %v659_v58 = vld [vmem:[%s1942_s16 + $0x10] sm:$0xff] }
  0x7c   : > { %892 = vmatprep.subr.mxu1 %v734_v37  ;;  %804 = vmatpush1.msra.mxu0 %v669_v38  ;;  %v723_v59 = vld [vmem:[%s1942_s16 + $0x210] sm:$0xff]  ;;  %v658_v60 = vld [vmem:[%s1942_s16 + $0x8] sm:$0xff]  ;;  %v657_v62 = vld [vmem:[%s1942_s16] sm:$0xff] }
  0x7d   : > { %893 = vmatpush1.msra.mxu1 %v733_v39  ;;  %805 = vmatprep.subr.mxu0 %v668_v40  ;;  %v722_v61 = vld [vmem:[%s1942_s16 + $0x208] sm:$0xff]  ;;  %v721_v63 = vld [vmem:[%s1942_s16 + $0x200] sm:$0xff]  ;;  %v720_v0 = vld [vmem:[%s1942_s16 + $0x1f8] sm:$0xff]  ;;  %v458_v39 = vshrl.u32 %v457_v30, 7 }
  0x7e   : > { %894 = vmatprep.subr.mxu1 %v732_v41  ;;  %806 = vmatpush1.msra.mxu0 %v667_v42  ;;  %v784_v1 = vld [vmem:[%s1942_s16 + $0x3f8] sm:$0xff]  ;;  %v719_v2 = vld [vmem:[%s1942_s16 + $0x1f0] sm:$0xff]  ;;  %v718_v4 = vld [vmem:[%s1942_s16 + $0x1e8] sm:$0xff] }
  0x7f   : > { %895 = vmatpush1.msra.mxu1 %v731_v43  ;;  %807 = vmatprep.subr.mxu0 %v666_v44  ;;  %v783_v3 = vld [vmem:[%s1942_s16 + $0x3f0] sm:$0xff]  ;;  %v782_v5 = vld [vmem:[%s1942_s16 + $0x3e8] sm:$0xff]  ;;  %v717_v6 = vld [vmem:[%s1942_s16 + $0x1e0] sm:$0xff] }
  0x80   : > { %896 = vmatprep.subr.mxu1 %v730_v45  ;;  %808 = vmatpush1.msra.mxu0 %v665_v46  ;;  %v781_v7 = vld [vmem:[%s1942_s16 + $0x3e0] sm:$0xff]  ;;  %v716_v8 = vld [vmem:[%s1942_s16 + $0x1d8] sm:$0xff]  ;;  %v715_v10 = vld [vmem:[%s1942_s16 + $0x1d0] sm:$0xff] }
  0x81   : > { %897 = vmatpush1.msra.mxu1 %v729_v47  ;;  %809 = vmatprep.subr.mxu0 %v664_v48  ;;  %v780_v9 = vld [vmem:[%s1942_s16 + $0x3d8] sm:$0xff]  ;;  %v779_v11 = vld [vmem:[%s1942_s16 + $0x3d0] sm:$0xff]  ;;  %v714_v12 = vld [vmem:[%s1942_s16 + $0x1c8] sm:$0xff]  ;;  %v2061_v48 = vsub.s32 1, %v458_v39 }
  0x82   : > { %898 = vmatprep.subr.mxu1 %v728_v49  ;;  %810 = vmatpush1.msra.mxu0 %v663_v50  ;;  %v778_v13 = vld [vmem:[%s1942_s16 + $0x3c8] sm:$0xff]  ;;  %v713_v14 = vld [vmem:[%s1942_s16 + $0x1c0] sm:$0xff]  ;;  %v712_v16 = vld [vmem:[%s1942_s16 + $0x1b8] sm:$0xff] }
  0x83   : > { %899 = vmatpush1.msra.mxu1 %v727_v51  ;;  %811 = vmatprep.subr.mxu0 %v662_v52  ;;  %v777_v15 = vld [vmem:[%s1942_s16 + $0x3c0] sm:$0xff]  ;;  %v776_v17 = vld [vmem:[%s1942_s16 + $0x3b8] sm:$0xff]  ;;  %v711_v18 = vld [vmem:[%s1942_s16 + $0x1b0] sm:$0xff]  ;;  %v635_v52 = vsub.s32 3, %v458_v39 }
  0x84   : > { %900 = vmatprep.subr.mxu1 %v726_v53  ;;  %812 = vmatpush1.msra.mxu0 %v661_v54  ;;  %v775_v19 = vld [vmem:[%s1942_s16 + $0x3b0] sm:$0xff]  ;;  %v710_v20 = vld [vmem:[%s1942_s16 + $0x1a8] sm:$0xff]  ;;  %v709_v22 = vld [vmem:[%s1942_s16 + $0x1a0] sm:$0xff] }
  0x85   : > { %901 = vmatpush1.msra.mxu1 %v725_v55  ;;  %813 = vmatprep.subr.mxu0 %v660_v56  ;;  %v774_v21 = vld [vmem:[%s1942_s16 + $0x3a8] sm:$0xff]  ;;  %v773_v23 = vld [vmem:[%s1942_s16 + $0x3a0] sm:$0xff]  ;;  %v708_v24 = vld [vmem:[%s1942_s16 + $0x198] sm:$0xff]  ;;  %v2070_v55 = vsub.s32 0, %v458_v39  ;;  %v631_v56 = vsub.s32 2, %v458_v39 }
  0x86   : > { %902 = vmatprep.subr.mxu1 %v724_v57  ;;  %814 = vmatpush1.msra.mxu0 %v659_v58  ;;  %v772_v25 = vld [vmem:[%s1942_s16 + $0x398] sm:$0xff]  ;;  %v707_v26 = vld [vmem:[%s1942_s16 + $0x190] sm:$0xff]  ;;  %v706_v28 = vld [vmem:[%s1942_s16 + $0x188] sm:$0xff] }
  0x87   : > { %903 = vmatpush1.msra.mxu1 %v723_v59  ;;  %815 = vmatprep.subr.mxu0 %v658_v60  ;;  %v771_v27 = vld [vmem:[%s1942_s16 + $0x390] sm:$0xff]  ;;  %v770_v29 = vld [vmem:[%s1942_s16 + $0x388] sm:$0xff]  ;;  %v705_v31 = vld [vmem:[%s1942_s16 + $0x180] sm:$0xff] }
  0x88   : > { %904 = vmatprep.subr.mxu1 %v722_v61  ;;  %816 = vmatpush1.msra.mxu0 %v657_v62  ;;  %v769_v32 = vld [vmem:[%s1942_s16 + $0x380] sm:$0xff]  ;;  %v704_v33 = vld [vmem:[%s1942_s16 + $0x178] sm:$0xff]  ;;  %v703_v35 = vld [vmem:[%s1942_s16 + $0x170] sm:$0xff] }
  0x89   : > { %905 = vmatpush1.msra.mxu1 %v721_v63  ;;  %817 = vmatprep.subr.mxu0 %v720_v0  ;;  %v768_v34 = vld [vmem:[%s1942_s16 + $0x378] sm:$0xff]  ;;  %v767_v36 = vld [vmem:[%s1942_s16 + $0x370] sm:$0xff]  ;;  %v702_v37 = vld [vmem:[%s1942_s16 + $0x168] sm:$0xff] }
  0x8a   : > { %906 = vmatprep.subr.mxu1 %v784_v1  ;;  %818 = vmatpush2.msra.mxu0 %v719_v2  ;;  %v766_v38 = vld [vmem:[%s1942_s16 + $0x368] sm:$0xff]  ;;  %v701_v40 = vld [vmem:[%s1942_s16 + $0x160] sm:$0xff]  ;;  %v700_v42 = vld [vmem:[%s1942_s16 + $0x158] sm:$0xff] }
  0x8b   : > { %907 = vmatpush2.msra.mxu1 %v783_v3  ;;  %819 = vmatprep.subr.mxu0 %v718_v4  ;;  %v765_v41 = vld [vmem:[%s1942_s16 + $0x360] sm:$0xff]  ;;  %v764_v43 = vld [vmem:[%s1942_s16 + $0x358] sm:$0xff]  ;;  %v699_v44 = vld [vmem:[%s1942_s16 + $0x150] sm:$0xff] }
  0x8c   : > { %908 = vmatprep.subr.mxu1 %v782_v5  ;;  %820 = vmatpush2.msra.mxu0 %v717_v6  ;;  %v763_v45 = vld [vmem:[%s1942_s16 + $0x350] sm:$0xff]  ;;  %v698_v46 = vld [vmem:[%s1942_s16 + $0x148] sm:$0xff]  ;;  %v697_v49 = vld [vmem:[%s1942_s16 + $0x140] sm:$0xff] }
  0x8d   : > { %909 = vmatpush2.msra.mxu1 %v781_v7  ;;  %821 = vmatprep.subr.mxu0 %v716_v8  ;;  %v762_v47 = vld [vmem:[%s1942_s16 + $0x348] sm:$0xff]  ;;  %v761_v50 = vld [vmem:[%s1942_s16 + $0x340] sm:$0xff]  ;;  %v696_v53 = vld [vmem:[%s1942_s16 + $0x138] sm:$0xff] }
  0x8e   : > { %910 = vmatprep.subr.mxu1 %v780_v9  ;;  %822 = vmatpush2.msra.mxu0 %v715_v10  ;;  %v619_v51 = vld [vmem:[%s2374_s3] sm:$0xf]  ;;  %v760_v54 = vld [vmem:[%s1942_s16 + $0x338] sm:$0xff]  ;;  %v695_v57 = vld [vmem:[%s1942_s16 + $0x130] sm:$0xff] }
  0x8f   : > { %911 = vmatpush2.msra.mxu1 %v779_v11  ;;  %823 = vmatprep.subr.mxu0 %v714_v12  ;;  %v759_v58 = vld [vmem:[%s1942_s16 + $0x330] sm:$0xff]  ;;  %v694_v59 = vld [vmem:[%s1942_s16 + $0x128] sm:$0xff]  ;;  %v693_v61 = vld [vmem:[%s1942_s16 + $0x120] sm:$0xff]  ;;  %v2078_v62 = vrot.slane %v619_v51, %v2061_v48  ;;  %v2084_v2 = vrot.slane %v619_v51, %v635_v52  ;;  %v2091_v6 = vrot.slane %v619_v51, %v2070_v55 }
  0x90   : > { %912 = vmatprep.subr.mxu1 %v778_v13  ;;  %824 = vmatpush2.msra.mxu0 %v713_v14  ;;  %v758_v60 = vld [vmem:[%s1942_s16 + $0x328] sm:$0xff]  ;;  %v757_v63 = vld [vmem:[%s1942_s16 + $0x320] sm:$0xff]  ;;  %v692_v0 = vld [vmem:[%s1942_s16 + $0x118] sm:$0xff]  ;;  %v2093_v7 = vrot.slane %v619_v51, %v631_v56 }
  0x91   : > { %913 = vmatpush2.msra.mxu1 %v777_v15  ;;  %825 = vmatprep.subr.mxu0 %v712_v16  ;;  %v2082_v1 = vld [vmem:[#allocation2 + $0x8] sm:$0xff]  ;;  %v756_v3 = vld [vmem:[%s1942_s16 + $0x318] sm:$0xff]  ;;  %v691_v4 = vld [vmem:[%s1942_s16 + $0x110] sm:$0xff] }
  0x92   : > { %914 = vmatprep.subr.mxu1 %v776_v17  ;;  %826 = vmatpush2.msra.mxu0 %v711_v18  ;;  %v2088_v5 = vld [vmem:[#allocation2 + $0x18] sm:$0xff]  ;;  %v755_v8 = vld [vmem:[%s1942_s16 + $0x310] sm:$0xff]  ;;  %v2096_v9 = vld [vmem:[#allocation2] sm:$0xff]  ;;  %v642_v13 = vmul.f32 %v2078_v62, %v2082_v1 }
  0x93   : > { %915 = vmatpush2.msra.mxu1 %v775_v19  ;;  %827 = vmatprep.subr.mxu0 %v710_v20  ;;  %v2098_v10 = vld [vmem:[#allocation2 + $0x10] sm:$0xff]  ;;  %v690_v11 = vld [vmem:[%s1942_s16 + $0x108] sm:$0xff]  ;;  %v689_v14 = vld [vmem:[%s1942_s16 + $0x100] sm:$0xff]  ;;  %v644_v15 = vmul.f32 %v2084_v2, %v2088_v5  ;;  %v641_v17 = vmul.f32 %v2091_v6, %v2096_v9 }
  0x94   : > { %916 = vmatprep.subr.mxu1 %v774_v21  ;;  %828 = vmatpush2.msra.mxu0 %v709_v22  ;;  %v754_v12 = vld [vmem:[%s1942_s16 + $0x308] sm:$0xff]  ;;  %v753_v16 = vld [vmem:[%s1942_s16 + $0x300] sm:$0xff]  ;;  %v643_v18 = vmul.f32 %v2093_v7, %v2098_v10  ;;  %v522_v19 = vld [vmem:[%s1935_s1 + $0xf8] sm:$0xff] }
  0x95   : > { %917 = vmatpush2.msra.mxu1 %v773_v23  ;;  %829 = vmatprep.subr.mxu0 %v708_v24  ;;  %v586_v20 = vld [vmem:[%s1935_s1 + $0x2f8] sm:$0xff]  ;;  %v521_v21 = vld [vmem:[%s1935_s1 + $0xf0] sm:$0xff]  ;;  %v520_v23 = vld [vmem:[%s1935_s1 + $0xe8] sm:$0xff] }
  0x96   : > { %918 = vmatprep.subr.mxu1 %v772_v25  ;;  %830 = vmatpush2.msra.mxu0 %v707_v26  ;;  %v585_v22 = vld [vmem:[%s1935_s1 + $0x2f0] sm:$0xff]  ;;  %v584_v24 = vld [vmem:[%s1935_s1 + $0x2e8] sm:$0xff]  ;;  %v519_v25 = vld [vmem:[%s1935_s1 + $0xe0] sm:$0xff] }
  0x97   : > { %919 = vmatpush2.msra.mxu1 %v771_v27  ;;  %831 = vmatprep.subr.mxu0 %v706_v28  ;;  %v583_v26 = vld [vmem:[%s1935_s1 + $0x2e0] sm:$0xff]  ;;  %v518_v27 = vld [vmem:[%s1935_s1 + $0xd8] sm:$0xff]  ;;  %v581_v30 = vld [vmem:[%s1935_s1 + $0x2d0] sm:$0xff] }
  0x98   : > { %920 = vmatprep.subr.mxu1 %v770_v29  ;;  %832 = vmatpush2.msra.mxu0 %v705_v31  ;;  %v582_v28 = vld [vmem:[%s1935_s1 + $0x2d8] sm:$0xff]  ;;  %v517_v29 = vld [vmem:[%s1935_s1 + $0xd0] sm:$0xff]  ;;  %v516_v31 = vld [vmem:[%s1935_s1 + $0xc8] sm:$0xff] }
  0x99   : > { %921 = vmatpush2.msra.mxu1 %v769_v32  ;;  %833 = vmatprep.subr.mxu0 %v704_v33  ;;  %v580_v32 = vld [vmem:[%s1935_s1 + $0x2c8] sm:$0xff]  ;;  %v515_v33 = vld [vmem:[%s1935_s1 + $0xc0] sm:$0xff]  ;;  %v506_v52 = vld [vmem:[%s1935_s1 + $0x78] sm:$0xff] }
  0x9a   : > { %922 = vmatprep.subr.mxu1 %v768_v34  ;;  %834 = vmatpush2.msra.mxu0 %v703_v35  ;;  %v579_v34 = vld [vmem:[%s1935_s1 + $0x2c0] sm:$0xff]  ;;  %v514_v35 = vld [vmem:[%s1935_s1 + $0xb8] sm:$0xff]  ;;  %v512_v39 = vld [vmem:[%s1935_s1 + $0xa8] sm:$0xff] }
  0x9b   : > { %923 = vmatpush2.msra.mxu1 %v767_v36  ;;  %835 = vmatprep.subr.mxu0 %v702_v37  ;;  %v578_v36 = vld [vmem:[%s1935_s1 + $0x2b8] sm:$0xff]  ;;  %v513_v37 = vld [vmem:[%s1935_s1 + $0xb0] sm:$0xff]  ;;  %v571_v51 = vld [vmem:[%s1935_s1 + $0x280] sm:$0xff] }
  0x9c   : > { %924 = vmatprep.subr.mxu1 %v766_v38  ;;  %836 = vmatpush2.msra.mxu0 %v701_v40  ;;  %v577_v38 = vld [vmem:[%s1935_s1 + $0x2b0] sm:$0xff]  ;;  %v576_v40 = vld [vmem:[%s1935_s1 + $0x2a8] sm:$0xff] }
  0x9d   : > { %925 = vmatpush2.msra.mxu1 %v765_v41  ;;  %837 = vmatprep.subr.mxu0 %v700_v42  ;;  %v511_v41 = vld [vmem:[%s1935_s1 + $0xa0] sm:$0xff]  ;;  %v569_v56 = vld [vmem:[%s1935_s1 + $0x270] sm:$0xff] }
  0x9e   : > { %926 = vmatprep.subr.mxu1 %v764_v43  ;;  %838 = vmatpush2.msra.mxu0 %v699_v44  ;;  %v575_v42 = vld [vmem:[%s1935_s1 + $0x2a0] sm:$0xff]  ;;  %v510_v43 = vld [vmem:[%s1935_s1 + $0x98] sm:$0xff] }
  0x9f   : > { %927 = vmatpush2.msra.mxu1 %v763_v45  ;;  %839 = vmatprep.subr.mxu0 %v698_v46  ;;  %v574_v44 = vld [vmem:[%s1935_s1 + $0x298] sm:$0xff]  ;;  %v509_v45 = vld [vmem:[%s1935_s1 + $0x90] sm:$0xff] }
  0xa0   : > { %928 = vmatprep.subr.mxu1 %v762_v47  ;;  %840 = vmatpush2.msra.mxu0 %v697_v49  ;;  %v573_v46 = vld [vmem:[%s1935_s1 + $0x290] sm:$0xff]  ;;  %v508_v47 = vld [vmem:[%s1935_s1 + $0x88] sm:$0xff] }
  0xa1   : > { %929 = vmatpush2.msra.mxu1 %v761_v50  ;;  %841 = vmatprep.subr.mxu0 %v696_v53  ;;  %v572_v49 = vld [vmem:[%s1935_s1 + $0x288] sm:$0xff]  ;;  %v507_v50 = vld [vmem:[%s1935_s1 + $0x80] sm:$0xff]  ;;  %v570_v53 = vld [vmem:[%s1935_s1 + $0x278] sm:$0xff] }
  0xa2   : > { %930 = vmatprep.subr.mxu1 %v760_v54  ;;  %842 = vmatpush2.msra.mxu0 %v695_v57  ;;  %v505_v54 = vld [vmem:[%s1935_s1 + $0x70] sm:$0xff]  ;;  %v504_v57 = vld [vmem:[%s1935_s1 + $0x68] sm:$0xff] }
  0xa3   : > { %931 = vmatpush2.msra.mxu1 %v759_v58  ;;  %843 = vmatprep.subr.mxu0 %v694_v59  ;;  %v568_v58 = vld [vmem:[%s1935_s1 + $0x268] sm:$0xff]  ;;  %v503_v59 = vld [vmem:[%s1935_s1 + $0x60] sm:$0xff] }
  0xa4   : > { %932 = vmatprep.subr.mxu1 %v758_v60  ;;  %844 = vmatpush2.msra.mxu0 %v693_v61  ;;  %v567_v60 = vld [vmem:[%s1935_s1 + $0x260] sm:$0xff]  ;;  %v502_v61 = vld [vmem:[%s1935_s1 + $0x58] sm:$0xff] }
  0xa5   : > { %933 = vmatpush2.msra.mxu1 %v757_v63  ;;  %845 = vmatprep.subr.mxu0 %v692_v0  ;;  %v566_v63 = vld [vmem:[%s1935_s1 + $0x258] sm:$0xff]  ;;  %v501_v0 = vld [vmem:[%s1935_s1 + $0x50] sm:$0xff] }
  0xa6   : > { %934 = vmatprep.subr.mxu1 %v756_v3  ;;  %846 = vmatpush2.msra.mxu0 %v691_v4  ;;  %v565_v3 = vld [vmem:[%s1935_s1 + $0x250] sm:$0xff]  ;;  %v500_v4 = vld [vmem:[%s1935_s1 + $0x48] sm:$0xff] }
  0xa7   : > { %935 = vmatpush2.msra.mxu1 %v755_v8  ;;  %847 = vmatprep.subr.mxu0 %v690_v11  ;;  %v564_v8 = vld [vmem:[%s1935_s1 + $0x248] sm:$0xff]  ;;  %v499_v11 = vld [vmem:[%s1935_s1 + $0x40] sm:$0xff] }
  0xa8   : > { %936 = vmatprep.subr.mxu1 %v754_v12  ;;  %848 = vmatpush2.msra.mxu0 %v689_v14  ;;  %v563_v12 = vld [vmem:[%s1935_s1 + $0x240] sm:$0xff]  ;;  %v562_v14 = vld [vmem:[%s1935_s1 + $0x238] sm:$0xff] }
  0xa9   : > { %849 = vmatprep.mubr.f32.mxu0 %v642_v13  ;;  %937 = vmatpush2.msra.mxu1 %v753_v16  ;;  %v498_v13 = vld [vmem:[%s1935_s1 + $0x38] sm:$0xff]  ;;  %v561_v16 = vld [vmem:[%s1935_s1 + $0x230] sm:$0xff] }
  0xaa   : > { %938 = vmatprep.mubr.f32.mxu1 %v644_v15  ;;  %850 = vmatmul.mubr.f32.vlgmr.msra.gmra.mxu0 %v641_v17  ;;  %v497_v15 = vld [vmem:[%s1935_s1 + $0x30] sm:$0xff]  ;;  %v496_v17 = vld [vmem:[%s1935_s1 + $0x28] sm:$0xff] }
  0xab   : > { %939 = vmatmul.mubr.f32.vlgmr.msra.gmra.mxu1 %v643_v18  ;;  %991 = vmatprep.subr.mxu0 %v522_v19  ;;  %v560_v18 = vld [vmem:[%s1935_s1 + $0x228] sm:$0xff]  ;;  %v495_v19 = vld [vmem:[%s1935_s1 + $0x20] sm:$0xff] }
  0xac   : > { %1080 = vmatprep.subr.mxu1 %v586_v20  ;;  %992 = vmatpush1.msra.mxu0 %v521_v21  ;;  %v559_v20 = vld [vmem:[%s1935_s1 + $0x220] sm:$0xff]  ;;  %v494_v21 = vld [vmem:[%s1935_s1 + $0x18] sm:$0xff] }
  0xad   : > { %1081 = vmatpush1.msra.mxu1 %v585_v22  ;;  %993 = vmatprep.subr.mxu0 %v520_v23  ;;  %v558_v22 = vld [vmem:[%s1935_s1 + $0x218] sm:$0xff]  ;;  %v493_v23 = vld [vmem:[%s1935_s1 + $0x10] sm:$0xff] }
  0xae   : > { %1082 = vmatprep.subr.mxu1 %v584_v24  ;;  %994 = vmatpush1.msra.mxu0 %v519_v25  ;;  %v557_v24 = vld [vmem:[%s1935_s1 + $0x210] sm:$0xff]  ;;  %v492_v25 = vld [vmem:[%s1935_s1 + $0x8] sm:$0xff] }
  0xaf   : > { %1083 = vmatpush1.msra.mxu1 %v583_v26  ;;  %995 = vmatprep.subr.mxu0 %v518_v27  ;;  %v556_v26 = vld [vmem:[%s1935_s1 + $0x208] sm:$0xff]  ;;  %v491_v27 = vld [vmem:[%s1935_s1] sm:$0xff] }
  0xb0   : > { %1084 = vmatprep.subr.mxu1 %v582_v28  ;;  %996 = vmatpush1.msra.mxu0 %v517_v29  ;;  %v555_v28 = vld [vmem:[%s1935_s1 + $0x200] sm:$0xff]  ;;  %v554_v29 = vld [vmem:[%s1935_s1 + $0x1f8] sm:$0xff] }
  0xb1   : > { %1085 = vmatpush1.msra.mxu1 %v581_v30  ;;  %997 = vmatprep.subr.mxu0 %v516_v31  ;;  %v618_v30 = vld [vmem:[%s1935_s1 + $0x3f8] sm:$0xff]  ;;  %v553_v31 = vld [vmem:[%s1935_s1 + $0x1f0] sm:$0xff] }
  0xb2   : > { %1086 = vmatprep.subr.mxu1 %v580_v32  ;;  %998 = vmatpush1.msra.mxu0 %v515_v33  ;;  %v617_v32 = vld [vmem:[%s1935_s1 + $0x3f0] sm:$0xff]  ;;  %v552_v33 = vld [vmem:[%s1935_s1 + $0x1e8] sm:$0xff] }
  0xb3   : > { %1087 = vmatpush1.msra.mxu1 %v579_v34  ;;  %999 = vmatprep.subr.mxu0 %v514_v35  ;;  %v616_v34 = vld [vmem:[%s1935_s1 + $0x3e8] sm:$0xff]  ;;  %v551_v35 = vld [vmem:[%s1935_s1 + $0x1e0] sm:$0xff] }
  0xb4   : > { %1088 = vmatprep.subr.mxu1 %v578_v36  ;;  %1000 = vmatpush1.msra.mxu0 %v513_v37  ;;  %v615_v36 = vld [vmem:[%s1935_s1 + $0x3e0] sm:$0xff]  ;;  %v550_v37 = vld [vmem:[%s1935_s1 + $0x1d8] sm:$0xff] }
  0xb5   : > { %1089 = vmatpush1.msra.mxu1 %v577_v38  ;;  %1001 = vmatprep.subr.mxu0 %v512_v39  ;;  %v614_v38 = vld [vmem:[%s1935_s1 + $0x3d8] sm:$0xff]  ;;  %v549_v39 = vld [vmem:[%s1935_s1 + $0x1d0] sm:$0xff] }
  0xb6   : > { %1090 = vmatprep.subr.mxu1 %v576_v40  ;;  %1002 = vmatpush1.msra.mxu0 %v511_v41  ;;  %v613_v40 = vld [vmem:[%s1935_s1 + $0x3d0] sm:$0xff]  ;;  %v548_v41 = vld [vmem:[%s1935_s1 + $0x1c8] sm:$0xff] }
  0xb7   : > { %1091 = vmatpush1.msra.mxu1 %v575_v42  ;;  %1003 = vmatprep.subr.mxu0 %v510_v43  ;;  %v612_v42 = vld [vmem:[%s1935_s1 + $0x3c8] sm:$0xff]  ;;  %v547_v43 = vld [vmem:[%s1935_s1 + $0x1c0] sm:$0xff] }
  0xb8   : > { %1092 = vmatprep.subr.mxu1 %v574_v44  ;;  %1004 = vmatpush1.msra.mxu0 %v509_v45  ;;  %v611_v44 = vld [vmem:[%s1935_s1 + $0x3c0] sm:$0xff]  ;;  %v546_v45 = vld [vmem:[%s1935_s1 + $0x1b8] sm:$0xff] }
  0xb9   : > { %1093 = vmatpush1.msra.mxu1 %v573_v46  ;;  %1005 = vmatprep.subr.mxu0 %v508_v47  ;;  %v610_v46 = vld [vmem:[%s1935_s1 + $0x3b8] sm:$0xff]  ;;  %v545_v47 = vld [vmem:[%s1935_s1 + $0x1b0] sm:$0xff] }
  0xba   : > { %1094 = vmatprep.subr.mxu1 %v572_v49  ;;  %1006 = vmatpush1.msra.mxu0 %v507_v50  ;;  %v609_v49 = vld [vmem:[%s1935_s1 + $0x3b0] sm:$0xff]  ;;  %v544_v50 = vld [vmem:[%s1935_s1 + $0x1a8] sm:$0xff] }
  0xbb   : > { %1095 = vmatpush1.msra.mxu1 %v571_v51  ;;  %1007 = vmatprep.subr.mxu0 %v506_v52  ;;  %v608_v51 = vld [vmem:[%s1935_s1 + $0x3a8] sm:$0xff]  ;;  %v543_v52 = vld [vmem:[%s1935_s1 + $0x1a0] sm:$0xff] }
  0xbc   : > { %1096 = vmatprep.subr.mxu1 %v570_v53  ;;  %1008 = vmatpush1.msra.mxu0 %v505_v54  ;;  %v607_v53 = vld [vmem:[%s1935_s1 + $0x3a0] sm:$0xff]  ;;  %v542_v54 = vld [vmem:[%s1935_s1 + $0x198] sm:$0xff] }
  0xbd   : > { %1097 = vmatpush1.msra.mxu1 %v569_v56  ;;  %1009 = vmatprep.subr.mxu0 %v504_v57  ;;  %v606_v56 = vld [vmem:[%s1935_s1 + $0x398] sm:$0xff]  ;;  %v541_v57 = vld [vmem:[%s1935_s1 + $0x190] sm:$0xff] }
  0xbe   : > { %1098 = vmatprep.subr.mxu1 %v568_v58  ;;  %1010 = vmatpush1.msra.mxu0 %v503_v59  ;;  %v605_v58 = vld [vmem:[%s1935_s1 + $0x390] sm:$0xff]  ;;  %v2204_v59 = vld [vmem:[#allocation2 + $0x28] sm:$0xff] }
  0xbf   : > { %1099 = vmatpush1.msra.mxu1 %v567_v60  ;;  %1011 = vmatprep.subr.mxu0 %v502_v61  ;;  %v2206_v60 = vld [vmem:[#allocation2 + $0x38] sm:$0xff]  ;;  %v540_v61 = vld [vmem:[%s1935_s1 + $0x188] sm:$0xff] }
  0xc0   : > { %1100 = vmatprep.subr.mxu1 %v566_v63  ;;  %1012 = vmatpush1.msra.mxu0 %v501_v0  ;;  %v604_v63 = vld [vmem:[%s1935_s1 + $0x388] sm:$0xff]  ;;  %v539_v0 = vld [vmem:[%s1935_s1 + $0x180] sm:$0xff] }
  0xc1   : > { %1101 = vmatpush1.msra.mxu1 %v565_v3  ;;  %1013 = vmatprep.subr.mxu0 %v500_v4  ;;  %v603_v3 = vld [vmem:[%s1935_s1 + $0x380] sm:$0xff] }
  0xc2   : > { %1102 = vmatprep.subr.mxu1 %v564_v8  ;;  %1014 = vmatpush1.msra.mxu0 %v499_v11  ;;  %v2212_v4 = vld [vmem:[#allocation2 + $0x20] sm:$0xff]  ;;  %v2214_v8 = vld [vmem:[#allocation2 + $0x30] sm:$0xff]  ;;  %v538_v11 = vld [vmem:[%s1935_s1 + $0x178] sm:$0xff] }
  0xc3   : > { %1103 = vmatpush1.msra.mxu1 %v563_v12  ;;  %1015 = vmatprep.subr.mxu0 %v498_v13  ;;  %v602_v12 = vld [vmem:[%s1935_s1 + $0x378] sm:$0xff]  ;;  %v646_v13 = vmul.f32 %v2078_v62, %v2204_v59 }
  0xc4   : > { %1104 = vmatprep.subr.mxu1 %v562_v14  ;;  %1016 = vmatpush1.msra.mxu0 %v497_v15  ;;  %v648_v14 = vmul.f32 %v2084_v2, %v2206_v60  ;;  %v537_v15 = vld [vmem:[%s1935_s1 + $0x170] sm:$0xff] }
  0xc5   : > { %1105 = vmatpush1.msra.mxu1 %v561_v16  ;;  %1017 = vmatprep.subr.mxu0 %v496_v17  ;;  %v601_v16 = vld [vmem:[%s1935_s1 + $0x370] sm:$0xff]  ;;  %v645_v17 = vmul.f32 %v2091_v6, %v2212_v4 }
  0xc6   : > { %1106 = vmatprep.subr.mxu1 %v560_v18  ;;  %1018 = vmatpush1.msra.mxu0 %v495_v19  ;;  %v647_v18 = vmul.f32 %v2093_v7, %v2214_v8  ;;  %v2228_v19 = vld [vmem:[#allocation2 + $0x48] sm:$0xff] }
  0xc7   : > { %1107 = vmatpush1.msra.mxu1 %v559_v20  ;;  %1019 = vmatprep.subr.mxu0 %v494_v21  ;;  %v2230_v20 = vld [vmem:[#allocation2 + $0x58] sm:$0xff]  ;;  %v536_v21 = vld [vmem:[%s1935_s1 + $0x168] sm:$0xff] }
  0xc8   : > { %1108 = vmatprep.subr.mxu1 %v558_v22  ;;  %1020 = vmatpush1.msra.mxu0 %v493_v23  ;;  %v600_v22 = vld [vmem:[%s1935_s1 + $0x368] sm:$0xff]  ;;  %v535_v23 = vld [vmem:[%s1935_s1 + $0x160] sm:$0xff] }
  0xc9   : > { %1109 = vmatpush1.msra.mxu1 %v557_v24  ;;  %1021 = vmatprep.subr.mxu0 %v492_v25  ;;  %v599_v24 = vld [vmem:[%s1935_s1 + $0x360] sm:$0xff] }
  0xca   : > { %1110 = vmatprep.subr.mxu1 %v556_v26  ;;  %1022 = vmatpush1.msra.mxu0 %v491_v27  ;;  %v2236_v25 = vld [vmem:[#allocation2 + $0x40] sm:$0xff]  ;;  %v2238_v26 = vld [vmem:[#allocation2 + $0x50] sm:$0xff]  ;;  %v534_v27 = vld [vmem:[%s1935_s1 + $0x158] sm:$0xff] }
  0xcb   : > { %1111 = vmatpush1.msra.mxu1 %v555_v28  ;;  %1023 = vmatprep.subr.mxu0 %v554_v29  ;;  %v598_v28 = vld [vmem:[%s1935_s1 + $0x358] sm:$0xff]  ;;  %v650_v29 = vmul.f32 %v2078_v62, %v2228_v19 }
  0xcc   : > { %1112 = vmatprep.subr.mxu1 %v618_v30  ;;  %1024 = vmatpush2.msra.mxu0 %v553_v31  ;;  %v652_v30 = vmul.f32 %v2084_v2, %v2230_v20  ;;  %v533_v31 = vld [vmem:[%s1935_s1 + $0x150] sm:$0xff] }
  0xcd   : > { %1113 = vmatpush2.msra.mxu1 %v617_v32  ;;  %1025 = vmatprep.subr.mxu0 %v552_v33  ;;  %v597_v32 = vld [vmem:[%s1935_s1 + $0x350] sm:$0xff]  ;;  %v649_v33 = vmul.f32 %v2091_v6, %v2236_v25 }
  0xce   : > { %1114 = vmatprep.subr.mxu1 %v616_v34  ;;  %1026 = vmatpush2.msra.mxu0 %v551_v35  ;;  %v651_v34 = vmul.f32 %v2093_v7, %v2238_v26  ;;  %v2252_v35 = vld [vmem:[#allocation2 + $0x68] sm:$0xff] }
  0xcf   : > { %1115 = vmatpush2.msra.mxu1 %v615_v36  ;;  %1027 = vmatprep.subr.mxu0 %v550_v37  ;;  %v2254_v36 = vld [vmem:[#allocation2 + $0x78] sm:$0xff]  ;;  %v532_v37 = vld [vmem:[%s1935_s1 + $0x148] sm:$0xff] }
  0xd0   : > { %1116 = vmatprep.subr.mxu1 %v614_v38  ;;  %1028 = vmatpush2.msra.mxu0 %v549_v39  ;;  %v596_v38 = vld [vmem:[%s1935_s1 + $0x348] sm:$0xff]  ;;  %v531_v39 = vld [vmem:[%s1935_s1 + $0x140] sm:$0xff] }
  0xd1   : > { %1117 = vmatpush2.msra.mxu1 %v613_v40  ;;  %1029 = vmatprep.subr.mxu0 %v548_v41  ;;  %v595_v40 = vld [vmem:[%s1935_s1 + $0x340] sm:$0xff] }
  0xd2   : > { %1118 = vmatprep.subr.mxu1 %v612_v42  ;;  %1030 = vmatpush2.msra.mxu0 %v547_v43  ;;  %v487_v41 = vld [vmem:[#allocation2 + $0x60] sm:$0xff]  ;;  %v489_v42 = vld [vmem:[#allocation2 + $0x70] sm:$0xff]  ;;  %v530_v43 = vld [vmem:[%s1935_s1 + $0x138] sm:$0xff] }
  0xd3   : > { %1119 = vmatpush2.msra.mxu1 %v611_v44  ;;  %1031 = vmatprep.subr.mxu0 %v546_v45  ;;  %v594_v44 = vld [vmem:[%s1935_s1 + $0x338] sm:$0xff]  ;;  %v654_v45 = vmul.f32 %v2078_v62, %v2252_v35  ;;  %v528_v62 = vld [vmem:[%s1935_s1 + $0x128] sm:$0xff] }
  0xd4   : > { %1120 = vmatprep.subr.mxu1 %v610_v46  ;;  %1032 = vmatpush2.msra.mxu0 %v545_v47  ;;  %v656_v46 = vmul.f32 %v2084_v2, %v2254_v36  ;;  %v529_v47 = vld [vmem:[%s1935_s1 + $0x130] sm:$0xff]  ;;  %v592_v2 = vld [vmem:[%s1935_s1 + $0x328] sm:$0xff] }
  0xd5   : > { %1121 = vmatpush2.msra.mxu1 %v609_v49  ;;  %1033 = vmatprep.subr.mxu0 %v544_v50  ;;  %v593_v49 = vld [vmem:[%s1935_s1 + $0x330] sm:$0xff]  ;;  %v653_v50 = vmul.f32 %v2091_v6, %v487_v41  ;;  %v526_v6 = vld [vmem:[%s1935_s1 + $0x118] sm:$0xff] }
  0xd6   : > { %1122 = vmatprep.subr.mxu1 %v608_v51  ;;  %1034 = vmatpush2.msra.mxu0 %v543_v52  ;;  %v655_v51 = vmul.f32 %v2093_v7, %v489_v42  ;;  %v527_v52 = vld [vmem:[%s1935_s1 + $0x120] sm:$0xff]  ;;  %v590_v7 = vld [vmem:[%s1935_s1 + $0x318] sm:$0xff] }
  0xd7   : > { %1123 = vmatpush2.msra.mxu1 %v607_v53  ;;  %1035 = vmatprep.subr.mxu0 %v542_v54  ;;  %v591_v53 = vld [vmem:[%s1935_s1 + $0x320] sm:$0xff]  ;;  %v525_v54 = vld [vmem:[%s1935_s1 + $0x110] sm:$0xff] }
  0xd8   : > { %1124 = vmatprep.subr.mxu1 %v606_v56  ;;  %1036 = vmatpush2.msra.mxu0 %v541_v57  ;;  %v589_v56 = vld [vmem:[%s1935_s1 + $0x310] sm:$0xff]  ;;  %v524_v57 = vld [vmem:[%s1935_s1 + $0x108] sm:$0xff] }
  0xd9   : > { %1125 = vmatpush2.msra.mxu1 %v605_v58  ;;  %1037 = vmatprep.subr.mxu0 %v540_v61  ;;  %v588_v58 = vld [vmem:[%s1935_s1 + $0x308] sm:$0xff]  ;;  %v523_v61 = vld [vmem:[%s1935_s1 + $0x100] sm:$0xff] }
  0xda   : > { %1126 = vmatprep.subr.mxu1 %v604_v63  ;;  %1038 = vmatpush2.msra.mxu0 %v539_v0  ;;  %v587_v63 = vld [vmem:[%s1935_s1 + $0x300] sm:$0xff]  ;;  %s1611_s1 = sshll.u32 %s1705_s17, 4  ;;  %s1612_s1 = int_to_ptr.vmem [resolvable:$false] %s1611_s1 }
  0xdb   : > { %1127 = vmatpush2.msra.mxu1 %v603_v3  ;;  %1039 = vmatprep.subr.mxu0 %v538_v11  ;;  %s1613_s26 = scalar_lea.vmem %s1612_s1, 2048  ;;  %p1614_p9 = scmp.lt.s32.totalorder %s2321_s28, %s1612_s1 }
  0xdc   : > { %1128 = vmatprep.subr.mxu1 %v602_v12  ;;  %855 = vmatprep.mubr.f32.mxu0 %v646_v13  ;;  %v971_v13 = vld [vmem:[%s1945_s29] sm:$0x3]  ;;  %p1615_p8 = scmp.lt.s32.totalorder %s1613_s26, %s1607_s13 }
  0xdd   : > { %944 = vmatprep.mubr.f32.mxu1 %v648_v14  ;;  %1040 = vmatpush2.msra.mxu0 %v537_v15 }
  0xde   : > { %1129 = vmatpush2.msra.mxu1 %v601_v16  ;;  %856 = vmatmul.mubr.f32.gmra.mxu0 %v645_v17  ;;  %v976_v17 = vrot.slane %v971_v13, %v2070_v55  ;;  %p1616_p11 = por %p1615_p8, %p1614_p9 }
  0xdf   : > { %945 = vmatmul.mubr.f32.gmra.mxu1 %v647_v18  ;;  %1041 = vmatprep.subr.mxu0 %v536_v21 }
  0xe0   : > { %1130 = vmatprep.subr.mxu1 %v600_v22  ;;  %1042 = vmatpush2.msra.mxu0 %v535_v23  ;;  %p1617_p1 = pnand %p1616_p11, %p1610_p3 }
  0xe1   : > { %1131 = vmatpush2.msra.mxu1 %v599_v24  ;;  %1043 = vmatprep.subr.mxu0 %v534_v27 }
  0xe2   : > { %1132 = vmatprep.subr.mxu1 %v598_v28  ;;  %861 = vmatprep.mubr.f32.mxu0 %v650_v29 }
  0xe3   : > { %950 = vmatprep.mubr.f32.mxu1 %v652_v30  ;;  %1044 = vmatpush2.msra.mxu0 %v533_v31 }
  0xe4   : > { %1133 = vmatpush2.msra.mxu1 %v597_v32  ;;  %862 = vmatmul.mubr.f32.gmra.mxu0 %v649_v33 }
  0xe5   : > { %951 = vmatmul.mubr.f32.gmra.mxu1 %v651_v34  ;;  %1045 = vmatprep.subr.mxu0 %v532_v37 }
  0xe6   : > { %1134 = vmatprep.subr.mxu1 %v596_v38  ;;  %1046 = vmatpush2.msra.mxu0 %v531_v39 }
  0xe7   : > { %1135 = vmatpush2.msra.mxu1 %v595_v40  ;;  %1047 = vmatprep.subr.mxu0 %v530_v43 }
  0xe8   : > { %1136 = vmatprep.subr.mxu1 %v594_v44  ;;  %867 = vmatprep.mubr.f32.mxu0 %v654_v45 }
  0xe9   : > { %956 = vmatprep.mubr.f32.mxu1 %v656_v46  ;;  %1048 = vmatpush2.msra.mxu0 %v529_v47 }
  0xea   : > { %1137 = vmatpush2.msra.mxu1 %v593_v49  ;;  %868 = vmatmul.mubr.f32.gmra.mxu0 %v653_v50 }
  0xeb   : > { %957 = vmatmul.mubr.f32.gmra.mxu1 %v655_v51  ;;  %1049 = vmatprep.subr.mxu0 %v528_v62 }
  0xec   : > { %1138 = vmatprep.subr.mxu1 %v592_v2  ;;  %1050 = vmatpush2.msra.mxu0 %v527_v52 }
  0xed   : > { %1139 = vmatpush2.msra.mxu1 %v591_v53  ;;  %1051 = vmatprep.subr.mxu0 %v526_v6 }
  0xee   : > { %1140 = vmatprep.subr.mxu1 %v590_v7  ;;  %1052 = vmatpush2.msra.mxu0 %v525_v54 }
  0xef   : > { %1141 = vmatpush2.msra.mxu1 %v589_v56  ;;  %1053 = vmatprep.subr.mxu0 %v524_v57 }
  0xf0   : > { %1142 = vmatprep.subr.mxu1 %v588_v58  ;;  %1054 = vmatpush2.msra.mxu0 %v523_v61 }
  0xf1   : > { %1055 = vmatprep.mubr.f32.mxu0 %v2082_v1  ;;  %1143 = vmatpush2.msra.mxu1 %v587_v63 }
  0xf2   : > { %1144 = vmatprep.mubr.f32.mxu1 %v2088_v5  ;;  %1056 = vmatmul.mubr.f32.vlgmr.msra.gmra.mxu0 %v2096_v9 }
  0xf3   : > { %1145 = vmatmul.mubr.f32.vlgmr.msra.gmra.mxu1 %v2098_v10  ;;  %1061 = vmatprep.mubr.f32.mxu0 %v2204_v59 }
  0xf4   : > { %1150 = vmatprep.mubr.f32.mxu1 %v2206_v60 }
  0xf6   : > { %1062 = vmatmul.mubr.f32.gmra.mxu0 %v2212_v4 }
  0xf7   : > { %1151 = vmatmul.mubr.f32.gmra.mxu1 %v2214_v8  ;;  %1067 = vmatprep.mubr.f32.mxu0 %v2228_v19  ;;  %v980_v19 = vrot.slane %v971_v13, %v2061_v48 }
  0xf8   : > { %1156 = vmatprep.mubr.f32.mxu1 %v2230_v20  ;;  %v455_v20 = vld [vmem:[%s447_s23] sm:$0x3] }
  0xf9   : > { %v460_v27 = vrot.slane %v455_v20, %v2070_v55  ;;  %v464_v34 = vrot.slane %v455_v20, %v2061_v48 }
  0xfa   : > { %1068 = vmatmul.mubr.f32.gmra.mxu0 %v2236_v25 }
  0xfb   : > { %1157 = vmatmul.mubr.f32.gmra.mxu1 %v2238_v26  ;;  %1073 = vmatprep.mubr.f32.mxu0 %v2252_v35 }
  0xfc   : > { %1162 = vmatprep.mubr.f32.mxu1 %v2254_v36 }
  0xfe   : > { %1074 = vmatmul.mubr.f32.gmra.mxu0 %v487_v41 }
  0xff   : > { %1163 = vmatmul.mubr.f32.gmra.mxu1 %v489_v42 }
 0x16a   : > { %v851_v1 = vpop.f32.mrf.mxu0 }
 0x16b   : > { %v940_v5 = vpop.f32.mrf.mxu1 }
 0x16c   : > { %v853_v9 = vpop.f32.mrf.mxu0  ;;  %v941_v16 = vadd.f32 %v940_v5, %v851_v1 }
 0x16d   : > { %v942_v10 = vpop.f32.mrf.mxu1 }
 0x16e   : > { %v943_v18 = vadd.f32 %v942_v10, %v853_v9  ;;  %v983_v24 = vmul.f32 %v976_v17, %v941_v16 }
 0x170   : > { %v984_v30 = vmul.f32 %v980_v19, %v943_v18 }
 0x19e   : > { %v857_v59 = vpop.f32.mrf.mxu0 }
 0x19f   : > { %v946_v60 = vpop.f32.mrf.mxu1 }
 0x1a0   : > { %v859_v0 = vpop.f32.mrf.mxu0  ;;  %v947_v23 = vadd.f32 %v946_v60, %v857_v59 }
 0x1a1   : > { %v948_v3 = vpop.f32.mrf.mxu1 }
 0x1a2   : > { %v949_v28 = vadd.f32 %v948_v3, %v859_v0  ;;  %v985_v37 = vmul.f32 %v976_v17, %v947_v23 }
 0x1a4   : > { %v863_v4 = vpop.f32.mrf.mxu0  ;;  %v986_v44 = vmul.f32 %v980_v19, %v949_v28 }
 0x1a5   : > { %v952_v8 = vpop.f32.mrf.mxu1 }
 0x1a6   : > { %v865_v11 = vpop.f32.mrf.mxu0  ;;  %v953_v31 = vadd.f32 %v952_v8, %v863_v4 }
 0x1a7   : > { %v954_v12 = vpop.f32.mrf.mxu1 }
 0x1a8   : > { %v955_v38 = vadd.f32 %v954_v12, %v865_v11  ;;  %v987_v46 = vmul.f32 %v976_v17, %v953_v31 }
 0x1aa   : > { %v869_v14 = vpop.f32.mrf.mxu0  ;;  %v988_v2 = vmul.f32 %v980_v19, %v955_v38 }
 0x1ab   : > { %v958_v15 = vpop.f32.mrf.mxu1 }
 0x1ac   : > { %v871_v21 = vpop.f32.mrf.mxu0  ;;  %v959_v47 = vadd.f32 %v958_v15, %v869_v14 }
 0x1ad   : > { %v960_v22 = vpop.f32.mrf.mxu1 }
 0x1ae   : > { %v961_v52 = vadd.f32 %v960_v22, %v871_v21  ;;  %v989_v63 = vmul.f32 %v976_v17, %v959_v47 }
 0x1b0   : > { %v990_v60 = vmul.f32 %v980_v19, %v961_v52 }
 0x1b2   : > { %v1057_v25 = vpop.f32.mrf.mxu0 }
 0x1b3   : > { %v1146_v26 = vpop.f32.mrf.mxu1  ;;  %v1058_v29 = vadd.f32 %v1057_v25, %v983_v24 }
 0x1b4   : > { %v1059_v32 = vpop.f32.mrf.mxu0 }
 0x1b5   : > { %v1148_v33 = vpop.f32.mrf.mxu1  ;;  %v1147_v35 = vadd.f32 %v1146_v26, %v1058_v29  ;;  %v1060_v36 = vadd.f32 %v1059_v32, %v984_v30 }
 0x1b6   : > { %v1063_v39 = vpop.f32.mrf.mxu0 }
 0x1b7   : > { %v1152_v40 = vpop.f32.mrf.mxu1  ;;  %v1169_v41 = vadd.f32 %v1147_v35, %v460_v27  ;;  %v1149_v42 = vadd.f32 %v1148_v33, %v1060_v36  ;;  %v1064_v43 = vadd.f32 %v1063_v39, %v985_v37 }
 0x1b8   : > { %v1065_v55 = vpop.f32.mrf.mxu0 }
 0x1b9   : > { %v1154_v45 = vpop.f32.mrf.mxu1  ;;  %1177 = vst [vmem:[%s2306_s18] sm:$0xff] %v1169_v41  ;;  %v1170_v48 = vadd.f32 %v1149_v42, %v464_v34  ;;  %v1153_v49 = vadd.f32 %v1152_v40, %v1064_v43  ;;  %v1066_v50 = vadd.f32 %v1065_v55, %v986_v44 }
 0x1ba   : > { %v1069_v51 = vpop.f32.mrf.mxu0 }
 0x1bb   : > { %v1158_v62 = vpop.f32.mrf.mxu1  ;;  %1178 = vst [vmem:[%s2306_s18 + $0x8] sm:$0xff] %v1170_v48  ;;  %v1171_v53 = vadd.f32 %v1153_v49, %v460_v27  ;;  %v1155_v6 = vadd.f32 %v1154_v45, %v1066_v50  ;;  %v1070_v7 = vadd.f32 %v1069_v51, %v987_v46 }
 0x1bc   : > { %v1071_v54 = vpop.f32.mrf.mxu0 }
 0x1bd   : > { %v1160_v56 = vpop.f32.mrf.mxu1  ;;  %1179 = vst [vmem:[%s2306_s18 + $0x10] sm:$0xff] %v1171_v53  ;;  %v1172_v57 = vadd.f32 %v1155_v6, %v464_v34  ;;  %v1159_v58 = vadd.f32 %v1158_v62, %v1070_v7  ;;  %v1072_v61 = vadd.f32 %v1071_v54, %v988_v2 }
 0x1be   : > { %v1075_v1 = vpop.f32.mrf.mxu0 }
 0x1bf   : > { %v1164_v5 = vpop.f32.mrf.mxu1  ;;  %1180 = vst [vmem:[%s2306_s18 + $0x18] sm:$0xff] %v1172_v57  ;;  %v1173_v9 = vadd.f32 %v1159_v58, %v460_v27  ;;  %v1161_v10 = vadd.f32 %v1160_v56, %v1072_v61  ;;  %v1076_v59 = vadd.f32 %v1075_v1, %v989_v63 }
 0x1c0   : > { %v1077_v0 = vpop.f32.mrf.mxu0 }
 0x1c1   : > { %1181 = vst [vmem:[%s2306_s18 + $0x20] sm:$0xff] %v1173_v9  ;;  %v1174_v3 = vadd.f32 %v1161_v10, %v464_v34  ;;  %v1165_v4 = vadd.f32 %v1164_v5, %v1076_v59  ;;  %v1078_v8 = vadd.f32 %v1077_v0, %v990_v60  ;;  %v1166_v11 = vpop.f32.mrf.mxu1 }
 0x1c3   : > { %1182 = vst [vmem:[%s2306_s18 + $0x28] sm:$0xff] %v1174_v3  ;;  %v1175_v12 = vadd.f32 %v1165_v4, %v460_v27  ;;  %v1167_v13 = vadd.f32 %v1166_v11, %v1078_v8 }
 0x1c5   : > { %1183 = vst [vmem:[%s2306_s18 + $0x30] sm:$0xff] %v1175_v12  ;;  %v1176_v14 = vadd.f32 %v1167_v13, %v464_v34 }
 0x1c7   : > { %1184 = vst [vmem:[%s2306_s18 + $0x38] sm:$0xff] %v1176_v14 }
 0x1c8   : > { %1620 = shalt.err (!%p1617_p1)
}
 0x1c9   : > { %s1621_s16 = scalar_lea.hbm %s2319_s27, 1024  ;;  %s1625_s10 = scalar_lea.hbm %s2377_s6, 2048 }
 0x1ca   : > { %p1622_p0 = scmp.ne.s32.totalorder %s2319_s27, %s1621_s16  ;;  %p1626_p5 = scmp.lt.s32.totalorder %s2319_s27, %s2377_s6 }
 0x1cb   : > { %p1627_p7 = scmp.lt.s32.totalorder %s1625_s10, %s1621_s16 }
 0x1cc   : > { %p1623_p6 = pnand %p1622_p0, %p1856_p12 }
 0x1cd   : > { %p1628_p10 = por %p1627_p7, %p1626_p5 }
 0x1ce   : > { %p1624_p4 = pneg %p1623_p6 }
 0x1d0   : > { %p1629_p2 = pnand %p1628_p10, %p1624_p4 }
 0x1d2   : > { %1632 = shalt.err (!%p1629_p2)
}
 0x1d3   : > { %s1706_s20 = smov 256   ;;  %s1707_s2 = smov 512  }
 0x1d4   : > { %s1708_s23 = smov 16  }
 0x1d5   : > { %1417 = dma.vmem_to_hbm [thread:$0]  (%p1856_p12), %s2321_s28, 1024, %s2319_s27, %s1186_s24, %s1706_s20, %s1707_s2, %s1708_s23  }
 0x1d6 PF: > { %s2413_s18 = sld [smem:[#allocation16_spill]]  ;;  %s1217_s19 = sand.u32 1, %s1675_s21  }
 0x1d7   : > { %s1218_s14 = scalar_lea.sflag [#allocation4], %s1217_s19 }
 0x1dc   : > { %p2414_p3 = scmp.ge.s32.totalorder %s2413_s18, 2 }
 0x1de   : > { %p1434_p9 = pnand %p2414_p3, %p1860_p13 }
 0x1e0   : > { %p1435_p8 = pneg %p1434_p9 }
 0x1e2   : > { %1670 = dma.done.wait (%p1435_p8), %s1218_s14, 1024  }
 0x1e3   : > { %1672 = vsyncadd (%p1435_p8), %s1218_s14, 4294966272  ;;  %s26_s26 = sadd.s32 1, %s2413_s18   ;;  %s2415_s15 = sld [smem:[#allocation15_spill]] }
 0x1e4   : > { %p23_p11 = scmp.ge.s32.totalorder %s26_s26, 4   ;;  %s2416_s23 = sld [smem:[#allocation18_spill]] }
 0x1e5   : > { %s2417_s11 = sld [smem:[#allocation17_spill]]  ;;  %s2418_s21 = smov %s1679_s22 }
 0x1e6   : > { %s2420_s24 = smov %s1691_s25 }
 0x1e7   :  { %25 = sbr.rel (!%p23_p11) target bundleno = 12 (0xc), region = 129 }
 0x1e9   : > { %s2419_s22 = smov %s2415_s15 }
 0x1eb   : > { %s2421_s25 = smov %s2417_s11 }
 0x1ec   :  { %1223 = vsyncpa [#allocation3], 1 }
 0x1ed   :  { %1225 = vsyncpa [#allocation3 + $0x1], 1 }
 0x1ee   :  { %1226 = vsyncpa [#allocation6], 1 }
 0x1ef   :  { %1228 = vsyncpa [#allocation6 + $0x1], 1 }
 0x1f0   :  { %1229 = vsyncpa [#allocation9], 1 }
 0x1f1   :  { %1231 = vsyncpa [#allocation9 + $0x1], 1 }
 0x1f2   :  { %1232 = vsyncpa [#allocation4], 1 }
 0x1f3   :  { %1234 = vsyncpa [#allocation4 + $0x1], 1 }

</bundles_post_ra>
